<compile_context>
chip_gen: v7x
topology: tpu7x:2x2x1
jax: 0.10.0
libtpu: 0.0.40
codegen_flags: <defaults>
</compile_context>

<pallas_src>
import jax
import jax.numpy as jnp
import numpy as np
from jax.experimental import pallas as pl
from jax.experimental.pallas import tpu as pltpu

# On v6e / v7x set this to jnp.bfloat16 for ~2x MXU throughput (accumulation
# stays f32 via preferred_element_type, and the c/h state stays f32).  Loosen
# the test tolerance to ~2e-2 if you do.
MATMUL_INPUT_DTYPE = jnp.float32


def _round_up(a, b):
    return (a + b - 1) // b * b


# ------------------------- fused decoder kernel -----------------------------
def decoder_kernel(x_ref, wih_ref, whh_ref, b_ref, wlin_ref, blin_ref,
                   out_ref, gx_scr, hs_scr):
    T, Np, _ = gx_scr.shape
    Hp = hs_scr.shape[2]
    md = MATMUL_INPUT_DTYPE

    # 1) Hoisted input projection: one big MXU matmul covering every step,
    #    with the combined LSTM bias folded in.
    gx = jnp.dot(x_ref[...].astype(md), wih_ref[...].astype(md),
                 preferred_element_type=jnp.float32) + b_ref[...]
    gx_scr[...] = gx.reshape(T, Np, 4 * Hp)          # leading-dim split: no-op

    # 2) Recurrence: only the small h @ W_hh matmul stays inside the loop.
    #    h and c ride in the fori_loop carry (vregs), not VMEM scratch.
    whh = whh_ref[...].astype(md)
    h0 = jnp.zeros((Np, Hp), jnp.float32)
    c0 = jnp.zeros((Np, Hp), jnp.float32)

    def step(t, carry):
        h, c = carry
        gates = gx_scr[t] + jnp.dot(h.astype(md), whh,
                                    preferred_element_type=jnp.float32)
        # PyTorch gate order i, f, g, o; each gate is an aligned 128-lane block.
        i_g = jax.nn.sigmoid(gates[:, 0 * Hp:1 * Hp])
        f_g = jax.nn.sigmoid(gates[:, 1 * Hp:2 * Hp])
        g_g = jnp.tanh(gates[:, 2 * Hp:3 * Hp])
        o_g = jax.nn.sigmoid(gates[:, 3 * Hp:4 * Hp])
        c = f_g * c + i_g * g_g
        h = o_g * jnp.tanh(c)
        hs_scr[t] = h
        return (h, c)

    jax.lax.fori_loop(0, T, step, (h0, c0), unroll=True)  # short fixed trip

    # 3) Fused vocab projection: one big MXU matmul, lane-dense (Vp) store.
    hs2d = hs_scr[...].reshape(T * Np, Hp)           # leading-dim merge: no-op
    out_ref[...] = (jnp.dot(hs2d.astype(md), wlin_ref[...].astype(md),
                            preferred_element_type=jnp.float32)
                    + blin_ref[...]).astype(out_ref.dtype)


def decoder_pallas(x2d, wih_p, whh_p, bias_p, wlin_p, blin_p, *, T, Np):
    """x2d: (T*Np, E); wih_p: (E, 4Hp); whh_p: (Hp, 4Hp); wlin_p: (Hp, Vp)."""
    M, E = x2d.shape                     # M == T * Np
    Hp = whh_p.shape[0]
    G = 4 * Hp
    Vp = wlin_p.shape[1]
    cost = pl.CostEstimate(
        flops=2 * M * E * G + T * 2 * Np * Hp * G + 2 * M * Hp * Vp,
        transcendentals=5 * T * Np * Hp,           # 3 sigmoid + 2 tanh / elem
        bytes_accessed=4 * (M * E + E * G + Hp * G + G + Hp * Vp + Vp + M * Vp),
    )
    return pl.pallas_call(
        decoder_kernel,
        out_shape=jax.ShapeDtypeStruct((M, Vp), jnp.float32),
        grid=(1,),
        in_specs=[
            pl.BlockSpec((M, E), lambda i: (0, 0)),     # x (all time steps)
            pl.BlockSpec((E, G), lambda i: (0, 0)),     # W_ih^T (padded)
            pl.BlockSpec((Hp, G), lambda i: (0, 0)),    # W_hh^T (padded)
            pl.BlockSpec((1, G), lambda i: (0, 0)),     # combined LSTM bias
            pl.BlockSpec((Hp, Vp), lambda i: (0, 0)),   # W_lin^T (padded)
            pl.BlockSpec((1, Vp), lambda i: (0, 0)),    # linear bias
        ],
        out_specs=pl.BlockSpec((M, Vp), lambda i: (0, 0)),
        scratch_shapes=[
            pltpu.VMEM((T, Np, G), jnp.float32),    # precomputed x-gates
            pltpu.VMEM((T, Np, Hp), jnp.float32),   # all hidden states
        ],
        compiler_params=pltpu.CompilerParams(
            dimension_semantics=("arbitrary",)),    # single sequential block
        cost_estimate=cost,
    )(x2d, wih_p, whh_p, bias_p, wlin_p, blin_p)


# ----------------------- one-time parameter prep -----------------------------
def prepare_params(params):
    """Transpose + pad weights ONCE to MXU/lane-friendly shapes.

    Each of the 4 gates gets its own Hp(=128-multiple)-lane block; padded
    rows/lanes are zero, which keeps the padded h/c lanes exactly zero, so the
    math on the real lanes is bit-identical to the unpadded computation.
    """
    w_ih = np.asarray(params["w_ih"])     # (4H, E)
    w_hh = np.asarray(params["w_hh"])     # (4H, H)
    w_lin = np.asarray(params["w_lin"])   # (V, H)
    b = np.asarray(params["b_ih"]) + np.asarray(params["b_hh"])
    b_lin = np.asarray(params["b_lin"])
    H = w_hh.shape[1]
    E = w_ih.shape[1]
    V = w_lin.shape[0]
    Hp = _round_up(H, 128)
    Vp = _round_up(V, 128)

    wih_p = np.zeros((E, 4 * Hp), np.float32)
    whh_p = np.zeros((Hp, 4 * Hp), np.float32)
    bias_p = np.zeros((1, 4 * Hp), np.float32)
    for k in range(4):                    # PyTorch gate order i, f, g, o
        wih_p[:, k * Hp:k * Hp + H] = w_ih[k * H:(k + 1) * H, :].T
        whh_p[:H, k * Hp:k * Hp + H] = w_hh[k * H:(k + 1) * H, :].T
        bias_p[0, k * Hp:k * Hp + H] = b[k * H:(k + 1) * H]
    wlin_p = np.zeros((Hp, Vp), np.float32)
    wlin_p[:H, :V] = w_lin.T
    blin_p = np.zeros((1, Vp), np.float32)
    blin_p[0, :V] = b_lin

    return {
        "embed": params["embed"],
        "wih_p": jnp.asarray(wih_p), "whh_p": jnp.asarray(whh_p),
        "bias_p": jnp.asarray(bias_p),
        "wlin_p": jnp.asarray(wlin_p), "blin_p": jnp.asarray(blin_p),
        "H": H, "Hp": Hp, "V": V, "Vp": Vp, "E": E,
    }


# ------------------------------ forward --------------------------------------
def decoder_forward(prep, features, captions):
    # Embedding lookup + concat stay in plain JAX glue (gather).
    caps = captions[:, :-1]
    emb = jnp.take(prep["embed"], caps, axis=0)                  # (B, S-1, E)
    x = jnp.concatenate([features[:, None, :], emb], axis=1)     # (B, S, E)
    B, S, _ = x.shape
    # nn.LSTM default batch_first=False: axis 0 = time, axis 1 = batch.
    T, N = B, S
    Np = _round_up(N, 8)            # pad the per-step batch to 8 sublanes
    if Np != N:
        x = jnp.pad(x, ((0, 0), (0, Np - N), (0, 0)))
    x2d = x.reshape(T * Np, -1)
    out2d = decoder_pallas(x2d, prep["wih_p"], prep["whh_p"], prep["bias_p"],
                           prep["wlin_p"], prep["blin_p"], T=T, Np=Np)
    return out2d.reshape(T, Np, prep["Vp"])[:, :N, :prep["V"]]   # (B, S, V)


# --------------------------- pure-JAX reference -------------------------------
def ref_forward(params, features, captions):
    caps = captions[:, :-1]
    emb = jnp.take(params["embed"], caps, axis=0)
    x = jnp.concatenate([features[:, None, :], emb], axis=1)
    _, N, _ = x.shape
    H = params["w_hh"].shape[1]

    def step(carry, xt):
        h, c = carry
        gates = xt @ params["w_ih"].T + params["b_ih"] \
            + h @ params["w_hh"].T + params["b_hh"]
        i, f, g, o = jnp.split(gates, 4, axis=-1)
        i = jax.nn.sigmoid(i); f = jax.nn.sigmoid(f)
        g = jnp.tanh(g); o = jax.nn.sigmoid(o)
        c = f * c + i * g
        h = o * jnp.tanh(c)
        return (h, c), h

    init = (jnp.zeros((N, H), jnp.float32), jnp.zeros((N, H), jnp.float32))
    _, ys = jax.lax.scan(step, init, x)
    return ys @ params["w_lin"].T + params["b_lin"]


# TODO(synk): sample() (greedy decode with host-side .item() control flow) is
# host-driven and is not implemented as a kernel; only forward() is implemented.

if __name__ == "__main__":
    batch, seq_len = 4, 8
    embed_size, hidden_size, vocab_size = 32, 32, 48

    key = jax.random.PRNGKey(0)
    k = jax.random.split(key, 8)
    params = {
        "embed": 0.1 * jax.random.normal(k[0], (vocab_size, embed_size), jnp.float32),
        "w_ih": 0.1 * jax.random.normal(k[1], (4 * hidden_size, embed_size), jnp.float32),
        "w_hh": 0.1 * jax.random.normal(k[2], (4 * hidden_size, hidden_size), jnp.float32),
        "b_ih": 0.1 * jax.random.normal(k[3], (4 * hidden_size,), jnp.float32),
        "b_hh": 0.1 * jax.random.normal(k[4], (4 * hidden_size,), jnp.float32),
        "w_lin": 0.1 * jax.random.normal(k[5], (vocab_size, hidden_size), jnp.float32),
        "b_lin": 0.1 * jax.random.normal(k[6], (vocab_size,), jnp.float32),
    }

    features = jax.random.normal(k[7], (batch, embed_size), jnp.float32)
    captions = jax.random.randint(jax.random.PRNGKey(1), (batch, seq_len),
                                  0, vocab_size, dtype=jnp.int32)

    prep = prepare_params(params)                  # one-time weight prep
    out = jax.block_until_ready(decoder_forward(prep, features, captions))
    ref = jax.block_until_ready(ref_forward(params, features, captions))

    assert out.shape == (batch, seq_len, vocab_size), out.shape
    np.testing.assert_allclose(np.asarray(out), np.asarray(ref),
                               atol=1e-4, rtol=1e-4)
    print("KERNEL_OK")
</pallas_src>

<mosaic_0001>
module attributes {stable_mosaic.version = 11 : i64} {
  func.func @decoder_kernel(%arg0: i32, %arg1: memref<32x32xf32, #tpu.memory_space<vmem>>, %arg2: memref<32x512xf32, #tpu.memory_space<vmem>>, %arg3: memref<128x512xf32, #tpu.memory_space<vmem>>, %arg4: memref<1x512xf32, #tpu.memory_space<vmem>>, %arg5: memref<128x128xf32, #tpu.memory_space<vmem>>, %arg6: memref<1x128xf32, #tpu.memory_space<vmem>>, %arg7: memref<32x128xf32, #tpu.memory_space<vmem>>, %arg8: memref<4x8x512xf32, #tpu.memory_space<vmem>>, %arg9: memref<4x8x128xf32, #tpu.memory_space<vmem>>) attributes {dimension_semantics = [#tpu.dimension_semantics<arbitrary>], iteration_bounds = array<i64: 1>, scalar_prefetch = 0 : i64, scratch_operands = 2 : i64, tpu.core_type = #tpu.core_type<tc>, window_params = [{pipeline_mode = #tpu.pipeline_mode<synchronous>, transform_indices = @transform_0, window_bounds = array<i64: 32, 32>}, {pipeline_mode = #tpu.pipeline_mode<synchronous>, transform_indices = @transform_1, window_bounds = array<i64: 32, 512>}, {pipeline_mode = #tpu.pipeline_mode<synchronous>, transform_indices = @transform_2, window_bounds = array<i64: 128, 512>}, {pipeline_mode = #tpu.pipeline_mode<synchronous>, transform_indices = @transform_3, window_bounds = array<i64: 1, 512>}, {pipeline_mode = #tpu.pipeline_mode<synchronous>, transform_indices = @transform_4, window_bounds = array<i64: 128, 128>}, {pipeline_mode = #tpu.pipeline_mode<synchronous>, transform_indices = @transform_5, window_bounds = array<i64: 1, 128>}, {pipeline_mode = #tpu.pipeline_mode<synchronous>, transform_indices = @transform_6, window_bounds = array<i64: 32, 128>}]} {
    %c0 = arith.constant 0 : index
    %c0_0 = arith.constant 0 : index
    %0 = vector.load %arg1[%c0, %c0_0] : memref<32x32xf32, #tpu.memory_space<vmem>>, vector<32x32xf32>
    %c0_1 = arith.constant 0 : index
    %c0_2 = arith.constant 0 : index
    %1 = vector.load %arg2[%c0_1, %c0_2] : memref<32x512xf32, #tpu.memory_space<vmem>>, vector<32x512xf32>
    %cst = arith.constant dense<0.000000e+00> : vector<32x512xf32>
    %2 = tpu.matmul %0, %1, %cst {dimension_numbers = #tpu.dot_dimension_numbers<[1], [0], [0], [1], [0, 0, 1, 1], [], []>} : vector<32x32xf32>, vector<32x512xf32>, vector<32x512xf32> -> vector<32x512xf32>
    %c0_3 = arith.constant 0 : index
    %c0_4 = arith.constant 0 : index
    %3 = vector.load %arg4[%c0_3, %c0_4] : memref<1x512xf32, #tpu.memory_space<vmem>>, vector<1x512xf32>
    %4 = vector.broadcast %3 : vector<1x512xf32> to vector<32x512xf32>
    %5 = arith.addf %2, %4 : vector<32x512xf32>
    %6 = vector.shape_cast %5 : vector<32x512xf32> to vector<4x8x512xf32>
    %c0_5 = arith.constant 0 : index
    %c0_6 = arith.constant 0 : index
    %c0_7 = arith.constant 0 : index
    %7 = vector.load %arg8[%c0_5, %c0_6, %c0_7] : memref<4x8x512xf32, #tpu.memory_space<vmem>>, vector<4x8x512xf32>
    tpu.vector_store %arg8[%c0_5, %c0_6, %c0_7], %6 {strides = array<i32>} : memref<4x8x512xf32, #tpu.memory_space<vmem>>, vector<4x8x512xf32>,
    %c0_8 = arith.constant 0 : index
    %c0_9 = arith.constant 0 : index
    %8 = vector.load %arg3[%c0_8, %c0_9] : memref<128x512xf32, #tpu.memory_space<vmem>>, vector<128x512xf32>
    %cst_10 = arith.constant 0.000000e+00 : f32
    %9 = vector.broadcast %cst_10 : f32 to vector<8x128xf32>
    %cst_11 = arith.constant 0.000000e+00 : f32
    %10 = vector.broadcast %cst_11 : f32 to vector<8x128xf32>
    %c0_i32 = arith.constant 0 : i32
    %11 = arith.index_cast %c0_i32 : i32 to index
    %c0_12 = arith.constant 0 : index
    %c0_13 = arith.constant 0 : index
    %12 = vector.load %arg8[%11, %c0_12, %c0_13] : memref<4x8x512xf32, #tpu.memory_space<vmem>>, vector<1x8x512xf32>
    %13 = vector.shape_cast %12 : vector<1x8x512xf32> to vector<8x512xf32>
    %cst_14 = arith.constant dense<0.000000e+00> : vector<8x512xf32>
    %14 = tpu.matmul %9, %8, %cst_14 {dimension_numbers = #tpu.dot_dimension_numbers<[1], [0], [0], [1], [0, 0, 1, 1], [], []>} : vector<8x128xf32>, vector<128x512xf32>, vector<8x512xf32> -> vector<8x512xf32>
    %15 = arith.addf %13, %14 : vector<8x512xf32>
    %16 = vector.extract_strided_slice %15 {offsets = [0, 0], sizes = [8, 128], strides = [1, 1]} : vector<8x512xf32> to vector<8x128xf32>
    %17 = arith.negf %16 : vector<8x128xf32>
    %18 = math.exp %17 : vector<8x128xf32>
    %cst_15 = arith.constant 1.000000e+00 : f32
    %19 = vector.broadcast %cst_15 : f32 to vector<8x128xf32>
    %20 = arith.addf %19, %18 : vector<8x128xf32>
    %21 = arith.divf %19, %20 : vector<8x128xf32>
    %22 = vector.extract_strided_slice %15 {offsets = [0, 128], sizes = [8, 128], strides = [1, 1]} : vector<8x512xf32> to vector<8x128xf32>
    %23 = arith.negf %22 : vector<8x128xf32>
    %24 = math.exp %23 : vector<8x128xf32>
    %cst_16 = arith.constant 1.000000e+00 : f32
    %25 = vector.broadcast %cst_16 : f32 to vector<8x128xf32>
    %26 = arith.addf %25, %24 : vector<8x128xf32>
    %27 = arith.divf %25, %26 : vector<8x128xf32>
    %28 = vector.extract_strided_slice %15 {offsets = [0, 256], sizes = [8, 128], strides = [1, 1]} : vector<8x512xf32> to vector<8x128xf32>
    %29 = math.tanh %28 : vector<8x128xf32>
    %30 = vector.extract_strided_slice %15 {offsets = [0, 384], sizes = [8, 128], strides = [1, 1]} : vector<8x512xf32> to vector<8x128xf32>
    %31 = arith.negf %30 : vector<8x128xf32>
    %32 = math.exp %31 : vector<8x128xf32>
    %cst_17 = arith.constant 1.000000e+00 : f32
    %33 = vector.broadcast %cst_17 : f32 to vector<8x128xf32>
    %34 = arith.addf %33, %32 : vector<8x128xf32>
    %35 = arith.divf %33, %34 : vector<8x128xf32>
    %36 = arith.mulf %27, %10 : vector<8x128xf32>
    %37 = arith.mulf %21, %29 : vector<8x128xf32>
    %38 = arith.addf %36, %37 : vector<8x128xf32>
    %39 = math.tanh %38 : vector<8x128xf32>
    %40 = arith.mulf %35, %39 : vector<8x128xf32>
    %41 = arith.index_cast %c0_i32 : i32 to index
    %c0_18 = arith.constant 0 : index
    %c0_19 = arith.constant 0 : index
    %42 = vector.load %arg9[%41, %c0_18, %c0_19] : memref<4x8x128xf32, #tpu.memory_space<vmem>>, vector<1x8x128xf32>
    %43 = vector.shape_cast %42 : vector<1x8x128xf32> to vector<8x128xf32>
    %44 = vector.shape_cast %40 : vector<8x128xf32> to vector<1x8x128xf32>
    tpu.vector_store %arg9[%41, %c0_18, %c0_19], %44 {strides = array<i32>} : memref<4x8x128xf32, #tpu.memory_space<vmem>>, vector<1x8x128xf32>,
    %c1_i32 = arith.constant 1 : i32
    %45 = arith.index_cast %c1_i32 : i32 to index
    %c0_20 = arith.constant 0 : index
    %c0_21 = arith.constant 0 : index
    %46 = vector.load %arg8[%45, %c0_20, %c0_21] : memref<4x8x512xf32, #tpu.memory_space<vmem>>, vector<1x8x512xf32>
    %47 = vector.shape_cast %46 : vector<1x8x512xf32> to vector<8x512xf32>
    %cst_22 = arith.constant dense<0.000000e+00> : vector<8x512xf32>
    %48 = tpu.matmul %40, %8, %cst_22 {dimension_numbers = #tpu.dot_dimension_numbers<[1], [0], [0], [1], [0, 0, 1, 1], [], []>} : vector<8x128xf32>, vector<128x512xf32>, vector<8x512xf32> -> vector<8x512xf32>
    %49 = arith.addf %47, %48 : vector<8x512xf32>
    %50 = vector.extract_strided_slice %49 {offsets = [0, 0], sizes = [8, 128], strides = [1, 1]} : vector<8x512xf32> to vector<8x128xf32>
    %51 = arith.negf %50 : vector<8x128xf32>
    %52 = math.exp %51 : vector<8x128xf32>
    %cst_23 = arith.constant 1.000000e+00 : f32
    %53 = vector.broadcast %cst_23 : f32 to vector<8x128xf32>
    %54 = arith.addf %53, %52 : vector<8x128xf32>
    %55 = arith.divf %53, %54 : vector<8x128xf32>
    %56 = vector.extract_strided_slice %49 {offsets = [0, 128], sizes = [8, 128], strides = [1, 1]} : vector<8x512xf32> to vector<8x128xf32>
    %57 = arith.negf %56 : vector<8x128xf32>
    %58 = math.exp %57 : vector<8x128xf32>
    %cst_24 = arith.constant 1.000000e+00 : f32
    %59 = vector.broadcast %cst_24 : f32 to vector<8x128xf32>
    %60 = arith.addf %59, %58 : vector<8x128xf32>
    %61 = arith.divf %59, %60 : vector<8x128xf32>
    %62 = vector.extract_strided_slice %49 {offsets = [0, 256], sizes = [8, 128], strides = [1, 1]} : vector<8x512xf32> to vector<8x128xf32>
    %63 = math.tanh %62 : vector<8x128xf32>
    %64 = vector.extract_strided_slice %49 {offsets = [0, 384], sizes = [8, 128], strides = [1, 1]} : vector<8x512xf32> to vector<8x128xf32>
    %65 = arith.negf %64 : vector<8x128xf32>
    %66 = math.exp %65 : vector<8x128xf32>
    %cst_25 = arith.constant 1.000000e+00 : f32
    %67 = vector.broadcast %cst_25 : f32 to vector<8x128xf32>
    %68 = arith.addf %67, %66 : vector<8x128xf32>
    %69 = arith.divf %67, %68 : vector<8x128xf32>
    %70 = arith.mulf %61, %38 : vector<8x128xf32>
    %71 = arith.mulf %55, %63 : vector<8x128xf32>
    %72 = arith.addf %70, %71 : vector<8x128xf32>
    %73 = math.tanh %72 : vector<8x128xf32>
    %74 = arith.mulf %69, %73 : vector<8x128xf32>
    %75 = arith.index_cast %c1_i32 : i32 to index
    %c0_26 = arith.constant 0 : index
    %c0_27 = arith.constant 0 : index
    %76 = vector.load %arg9[%75, %c0_26, %c0_27] : memref<4x8x128xf32, #tpu.memory_space<vmem>>, vector<1x8x128xf32>
    %77 = vector.shape_cast %76 : vector<1x8x128xf32> to vector<8x128xf32>
    %78 = vector.shape_cast %74 : vector<8x128xf32> to vector<1x8x128xf32>
    tpu.vector_store %arg9[%75, %c0_26, %c0_27], %78 {strides = array<i32>} : memref<4x8x128xf32, #tpu.memory_space<vmem>>, vector<1x8x128xf32>,
    %c2_i32 = arith.constant 2 : i32
    %79 = arith.index_cast %c2_i32 : i32 to index
    %c0_28 = arith.constant 0 : index
    %c0_29 = arith.constant 0 : index
    %80 = vector.load %arg8[%79, %c0_28, %c0_29] : memref<4x8x512xf32, #tpu.memory_space<vmem>>, vector<1x8x512xf32>
    %81 = vector.shape_cast %80 : vector<1x8x512xf32> to vector<8x512xf32>
    %cst_30 = arith.constant dense<0.000000e+00> : vector<8x512xf32>
    %82 = tpu.matmul %74, %8, %cst_30 {dimension_numbers = #tpu.dot_dimension_numbers<[1], [0], [0], [1], [0, 0, 1, 1], [], []>} : vector<8x128xf32>, vector<128x512xf32>, vector<8x512xf32> -> vector<8x512xf32>
    %83 = arith.addf %81, %82 : vector<8x512xf32>
    %84 = vector.extract_strided_slice %83 {offsets = [0, 0], sizes = [8, 128], strides = [1, 1]} : vector<8x512xf32> to vector<8x128xf32>
    %85 = arith.negf %84 : vector<8x128xf32>
    %86 = math.exp %85 : vector<8x128xf32>
    %cst_31 = arith.constant 1.000000e+00 : f32
    %87 = vector.broadcast %cst_31 : f32 to vector<8x128xf32>
    %88 = arith.addf %87, %86 : vector<8x128xf32>
    %89 = arith.divf %87, %88 : vector<8x128xf32>
    %90 = vector.extract_strided_slice %83 {offsets = [0, 128], sizes = [8, 128], strides = [1, 1]} : vector<8x512xf32> to vector<8x128xf32>
    %91 = arith.negf %90 : vector<8x128xf32>
    %92 = math.exp %91 : vector<8x128xf32>
    %cst_32 = arith.constant 1.000000e+00 : f32
    %93 = vector.broadcast %cst_32 : f32 to vector<8x128xf32>
    %94 = arith.addf %93, %92 : vector<8x128xf32>
    %95 = arith.divf %93, %94 : vector<8x128xf32>
    %96 = vector.extract_strided_slice %83 {offsets = [0, 256], sizes = [8, 128], strides = [1, 1]} : vector<8x512xf32> to vector<8x128xf32>
    %97 = math.tanh %96 : vector<8x128xf32>
    %98 = vector.extract_strided_slice %83 {offsets = [0, 384], sizes = [8, 128], strides = [1, 1]} : vector<8x512xf32> to vector<8x128xf32>
    %99 = arith.negf %98 : vector<8x128xf32>
    %100 = math.exp %99 : vector<8x128xf32>
    %cst_33 = arith.constant 1.000000e+00 : f32
    %101 = vector.broadcast %cst_33 : f32 to vector<8x128xf32>
    %102 = arith.addf %101, %100 : vector<8x128xf32>
    %103 = arith.divf %101, %102 : vector<8x128xf32>
    %104 = arith.mulf %95, %72 : vector<8x128xf32>
    %105 = arith.mulf %89, %97 : vector<8x128xf32>
    %106 = arith.addf %104, %105 : vector<8x128xf32>
    %107 = math.tanh %106 : vector<8x128xf32>
    %108 = arith.mulf %103, %107 : vector<8x128xf32>
    %109 = arith.index_cast %c2_i32 : i32 to index
    %c0_34 = arith.constant 0 : index
    %c0_35 = arith.constant 0 : index
    %110 = vector.load %arg9[%109, %c0_34, %c0_35] : memref<4x8x128xf32, #tpu.memory_space<vmem>>, vector<1x8x128xf32>
    %111 = vector.shape_cast %110 : vector<1x8x128xf32> to vector<8x128xf32>
    %112 = vector.shape_cast %108 : vector<8x128xf32> to vector<1x8x128xf32>
    tpu.vector_store %arg9[%109, %c0_34, %c0_35], %112 {strides = array<i32>} : memref<4x8x128xf32, #tpu.memory_space<vmem>>, vector<1x8x128xf32>,
    %c3_i32 = arith.constant 3 : i32
    %113 = arith.index_cast %c3_i32 : i32 to index
    %c0_36 = arith.constant 0 : index
    %c0_37 = arith.constant 0 : index
    %114 = vector.load %arg8[%113, %c0_36, %c0_37] : memref<4x8x512xf32, #tpu.memory_space<vmem>>, vector<1x8x512xf32>
    %115 = vector.shape_cast %114 : vector<1x8x512xf32> to vector<8x512xf32>
    %cst_38 = arith.constant dense<0.000000e+00> : vector<8x512xf32>
    %116 = tpu.matmul %108, %8, %cst_38 {dimension_numbers = #tpu.dot_dimension_numbers<[1], [0], [0], [1], [0, 0, 1, 1], [], []>} : vector<8x128xf32>, vector<128x512xf32>, vector<8x512xf32> -> vector<8x512xf32>
    %117 = arith.addf %115, %116 : vector<8x512xf32>
    %118 = vector.extract_strided_slice %117 {offsets = [0, 0], sizes = [8, 128], strides = [1, 1]} : vector<8x512xf32> to vector<8x128xf32>
    %119 = arith.negf %118 : vector<8x128xf32>
    %120 = math.exp %119 : vector<8x128xf32>
    %cst_39 = arith.constant 1.000000e+00 : f32
    %121 = vector.broadcast %cst_39 : f32 to vector<8x128xf32>
    %122 = arith.addf %121, %120 : vector<8x128xf32>
    %123 = arith.divf %121, %122 : vector<8x128xf32>
    %124 = vector.extract_strided_slice %117 {offsets = [0, 128], sizes = [8, 128], strides = [1, 1]} : vector<8x512xf32> to vector<8x128xf32>
    %125 = arith.negf %124 : vector<8x128xf32>
    %126 = math.exp %125 : vector<8x128xf32>
    %cst_40 = arith.constant 1.000000e+00 : f32
    %127 = vector.broadcast %cst_40 : f32 to vector<8x128xf32>
    %128 = arith.addf %127, %126 : vector<8x128xf32>
    %129 = arith.divf %127, %128 : vector<8x128xf32>
    %130 = vector.extract_strided_slice %117 {offsets = [0, 256], sizes = [8, 128], strides = [1, 1]} : vector<8x512xf32> to vector<8x128xf32>
    %131 = math.tanh %130 : vector<8x128xf32>
    %132 = vector.extract_strided_slice %117 {offsets = [0, 384], sizes = [8, 128], strides = [1, 1]} : vector<8x512xf32> to vector<8x128xf32>
    %133 = arith.negf %132 : vector<8x128xf32>
    %134 = math.exp %133 : vector<8x128xf32>
    %cst_41 = arith.constant 1.000000e+00 : f32
    %135 = vector.broadcast %cst_41 : f32 to vector<8x128xf32>
    %136 = arith.addf %135, %134 : vector<8x128xf32>
    %137 = arith.divf %135, %136 : vector<8x128xf32>
    %138 = arith.mulf %129, %106 : vector<8x128xf32>
    %139 = arith.mulf %123, %131 : vector<8x128xf32>
    %140 = arith.addf %138, %139 : vector<8x128xf32>
    %141 = math.tanh %140 : vector<8x128xf32>
    %142 = arith.mulf %137, %141 : vector<8x128xf32>
    %143 = arith.index_cast %c3_i32 : i32 to index
    %c0_42 = arith.constant 0 : index
    %c0_43 = arith.constant 0 : index
    %144 = vector.load %arg9[%143, %c0_42, %c0_43] : memref<4x8x128xf32, #tpu.memory_space<vmem>>, vector<1x8x128xf32>
    %145 = vector.shape_cast %144 : vector<1x8x128xf32> to vector<8x128xf32>
    %146 = vector.shape_cast %142 : vector<8x128xf32> to vector<1x8x128xf32>
    tpu.vector_store %arg9[%143, %c0_42, %c0_43], %146 {strides = array<i32>} : memref<4x8x128xf32, #tpu.memory_space<vmem>>, vector<1x8x128xf32>,
    %c4_i32 = arith.constant 4 : i32
    %c0_44 = arith.constant 0 : index
    %c0_45 = arith.constant 0 : index
    %c0_46 = arith.constant 0 : index
    %147 = vector.load %arg9[%c0_44, %c0_45, %c0_46] : memref<4x8x128xf32, #tpu.memory_space<vmem>>, vector<4x8x128xf32>
    %148 = vector.shape_cast %147 : vector<4x8x128xf32> to vector<32x128xf32>
    %c0_47 = arith.constant 0 : index
    %c0_48 = arith.constant 0 : index
    %149 = vector.load %arg5[%c0_47, %c0_48] : memref<128x128xf32, #tpu.memory_space<vmem>>, vector<128x128xf32>
    %cst_49 = arith.constant dense<0.000000e+00> : vector<32x128xf32>
    %150 = tpu.matmul %148, %149, %cst_49 {dimension_numbers = #tpu.dot_dimension_numbers<[1], [0], [0], [1], [0, 0, 1, 1], [], []>} : vector<32x128xf32>, vector<128x128xf32>, vector<32x128xf32> -> vector<32x128xf32>
    %c0_50 = arith.constant 0 : index
    %c0_51 = arith.constant 0 : index
    %151 = vector.load %arg6[%c0_50, %c0_51] : memref<1x128xf32, #tpu.memory_space<vmem>>, vector<1x128xf32>
    %152 = vector.broadcast %151 : vector<1x128xf32> to vector<32x128xf32>
    %153 = arith.addf %150, %152 : vector<32x128xf32>
    %c0_52 = arith.constant 0 : index
    %c0_53 = arith.constant 0 : index
    %154 = vector.load %arg7[%c0_52, %c0_53] : memref<32x128xf32, #tpu.memory_space<vmem>>, vector<32x128xf32>
    tpu.vector_store %arg7[%c0_52, %c0_53], %153 {strides = array<i32>} : memref<32x128xf32, #tpu.memory_space<vmem>>, vector<32x128xf32>,
    return
  }
  func.func @transform_0(%arg0: i32) -> (i32, i32) {
    %c0_i32 = arith.constant 0 : i32
    %c0_i32_0 = arith.constant 0 : i32
    %c0_i32_1 = arith.constant 0 : i32
    return %c0_i32, %c0_i32_0 : i32, i32
  }
  func.func @transform_1(%arg0: i32) -> (i32, i32) {
    %c0_i32 = arith.constant 0 : i32
    %c0_i32_0 = arith.constant 0 : i32
    %c0_i32_1 = arith.constant 0 : i32
    return %c0_i32, %c0_i32_0 : i32, i32
  }
  func.func @transform_2(%arg0: i32) -> (i32, i32) {
    %c0_i32 = arith.constant 0 : i32
    %c0_i32_0 = arith.constant 0 : i32
    %c0_i32_1 = arith.constant 0 : i32
    return %c0_i32, %c0_i32_0 : i32, i32
  }
  func.func @transform_3(%arg0: i32) -> (i32, i32) {
    %c0_i32 = arith.constant 0 : i32
    %c0_i32_0 = arith.constant 0 : i32
    %c0_i32_1 = arith.constant 0 : i32
    return %c0_i32, %c0_i32_0 : i32, i32
  }
  func.func @transform_4(%arg0: i32) -> (i32, i32) {
    %c0_i32 = arith.constant 0 : i32
    %c0_i32_0 = arith.constant 0 : i32
    %c0_i32_1 = arith.constant 0 : i32
    return %c0_i32, %c0_i32_0 : i32, i32
  }
  func.func @transform_5(%arg0: i32) -> (i32, i32) {
    %c0_i32 = arith.constant 0 : i32
    %c0_i32_0 = arith.constant 0 : i32
    %c0_i32_1 = arith.constant 0 : i32
    return %c0_i32, %c0_i32_0 : i32, i32
  }
  func.func @transform_6(%arg0: i32) -> (i32, i32) {
    %c0_i32 = arith.constant 0 : i32
    %c0_i32_0 = arith.constant 0 : i32
    %c0_i32_1 = arith.constant 0 : i32
    return %c0_i32, %c0_i32_0 : i32, i32
  }
}

</mosaic_0001>

<bundles_post_ra>
// kernel: tpu_custom_call.1
= control target key start
LH: loop header
LB: loop body
LE: loop exit
PB: predicated region body
PF: predicated region fallthrough
CT: control target
= control target key end

     0   :  { %11 = vsyncpa [#allocation5], 0  ;;  %s2259_s0 = inlined_call_operand.hbm [shape: f32[32,32], index: 0, kind: input, shape index: {}]   ;;  %s2260_s1 = inlined_call_operand.hbm [shape: f32[32,512], index: 1, kind: input, shape index: {}]   ;;  %s2261_s2 = inlined_call_operand.hbm [shape: f32[128,512], index: 2, kind: input, shape index: {}]   ;;  %s2262_s3 = inlined_call_operand.vmem [shape: f32[1,512], index: 3, kind: input, shape index: {}]   ;;  %s2263_s4 = inlined_call_operand.hbm [shape: f32[128,128], index: 4, kind: input, shape index: {}]   ;;  %s2264_s5 = inlined_call_operand.vmem [shape: f32[1,128], index: 5, kind: input, shape index: {}]   ;;  %s2265_s6 = inlined_call_operand.hbm [shape: f32[32,128], index: 6, kind: output, shape index: {}]  }
   0x1   :  { %12 = vsyncpa [#allocation8], 0 }
   0x2   :  { %13 = vsyncpa [#allocation11], 0 }
   0x3   :  { %14 = vsyncpa [#allocation6], 0  ;;  %s1840_s21 = smov [#allocation7]   ;;  %s1722_s25 = scalar_lea.hbm %s2260_s1, 2048 }
   0x4   :  { %s32_s22 = sshll.u32 %s1840_s21, 4  ;;  %p1723_p0 = scmp.ne.s32.totalorder %s2260_s1, %s1722_s25  ;;  %s33_s22 = int_to_ptr.vmem [resolvable:$true] %s32_s22 }
   0x5   :  { %p1726_p1 = scmp.lt.u32.totalorder %s1722_s25, %s2260_s1 }
   0x7   :  { %p1728_p2 = pnand %p1726_p1, %p1723_p0 }
   0x9   :  { %1731 = shalt.err (!%p1728_p2)
}
   0xa   :  { %s1732_s30 = scalar_lea.vmem %s33_s22, 2048  ;;  %p1737_p4 = scmp.lt.s32.totalorder %s33_s22, %s33_s22 }
   0xb   :  { %p1733_p3 = scmp.ne.s32.totalorder %s33_s22, %s1732_s30  ;;  %p1738_p5 = scmp.lt.s32.totalorder %s1732_s30, %s1732_s30 }
   0xd   :  { %p1739_p6 = por %p1738_p5, %p1737_p4 }
   0xf   :  { %p1740_p7 = pnand %p1739_p6, %p1733_p3 }
  0x11   :  { %1743 = shalt.err (!%p1740_p7)
}
  0x12   :  { %s1841_s7 = smov 512   ;;  %s1842_s8 = smov 32  }
  0x13   :  { %38 = dma.hbm_to_vmem [thread:$0]  %s2260_s1, 2048, %s33_s22, [#allocation8], %s1841_s7, %s1841_s7, %s1842_s8  }
  0x14   :  { %s1843_s11 = smov [#allocation4]   ;;  %s1744_s15 = scalar_lea.hbm %s2259_s0, 512 }
  0x15   :  { %s20_s12 = sshll.u32 %s1843_s11, 4  ;;  %p1745_p8 = scmp.ne.s32.totalorder %s2259_s0, %s1744_s15  ;;  %s21_s12 = int_to_ptr.vmem [resolvable:$true] %s20_s12 }
  0x16   :  { %p1748_p9 = scmp.lt.u32.totalorder %s1744_s15, %s2259_s0 }
  0x18   :  { %p1750_p10 = pnand %p1748_p9, %p1745_p8 }
  0x1a   :  { %1753 = shalt.err (!%p1750_p10)
}
  0x1b   :  { %s1754_s20 = scalar_lea.vmem %s21_s12, 512  ;;  %p1759_p12 = scmp.lt.s32.totalorder %s21_s12, %s21_s12 }
  0x1c   :  { %p1755_p11 = scmp.ne.s32.totalorder %s21_s12, %s1754_s20  ;;  %p1760_p13 = scmp.lt.s32.totalorder %s1754_s20, %s1754_s20 }
  0x1e   :  { %p1761_p0 = por %p1760_p13, %p1759_p12 }
  0x20   :  { %p1762_p1 = pnand %p1761_p0, %p1755_p11 }
  0x22   :  { %1765 = shalt.err (!%p1762_p1)
}
  0x23   :  { %s1844_s1 = smov 128   ;;  %s1845_s21 = smov 8  }
  0x24   :  { %26 = dma.hbm_to_vmem [thread:$0]  %s2259_s0, 512, %s21_s12, [#allocation5], %s1844_s1, %s1844_s1, %s1845_s21  }
  0x25   :  { %s1846_s24 = smov [#allocation9]   ;;  %s1847_s26 = smov [#allocation10]  }
  0x26   :  { %s44_s25 = sshll.u32 %s1846_s24, 4  ;;  %s58_s27 = sshll.u32 %s1847_s26, 4  ;;  %s45_s25 = int_to_ptr.vmem [resolvable:$true] %s44_s25  ;;  %s1915_s27 = int_to_ptr.vmem [resolvable:$true] %s58_s27 }
  0x27   :  { %s1766_s30 = scalar_lea.hbm %s2261_s2, 8192 }
  0x28   :  { %p1767_p2 = scmp.ne.s32.totalorder %s2261_s2, %s1766_s30  ;;  %p1770_p3 = scmp.lt.u32.totalorder %s1766_s30, %s2261_s2 }
  0x2a   :  { %p1772_p4 = pnand %p1770_p3, %p1767_p2 }
  0x2c   :  { %1775 = shalt.err (!%p1772_p4)
}
  0x2d   :  { %s1776_s0 = scalar_lea.vmem %s45_s25, 8192  ;;  %p1781_p6 = scmp.lt.s32.totalorder %s45_s25, %s45_s25 }
  0x2e   :  { %p1777_p5 = scmp.ne.s32.totalorder %s45_s25, %s1776_s0  ;;  %p1782_p7 = scmp.lt.s32.totalorder %s1776_s0, %s1776_s0 }
  0x30   :  { %p1783_p8 = por %p1782_p7, %p1781_p6 }
  0x32   :  { %p1784_p9 = pnand %p1783_p8, %p1777_p5 }
  0x34   :  { %1787 = shalt.err (!%p1784_p9)
}
  0x35   :  { %50 = dma.hbm_to_vmem [thread:$0]  %s2261_s2, 8192, %s45_s25, [#allocation8], %s1841_s7, %s1841_s7, %s1842_s8  }
  0x36   :  { %s1788_s17 = scalar_lea.hbm %s2263_s4, 2048 }
  0x37   :  { %p1789_p10 = scmp.ne.s32.totalorder %s2263_s4, %s1788_s17  ;;  %p1792_p11 = scmp.lt.u32.totalorder %s1788_s17, %s2263_s4 }
  0x39   :  { %p1794_p12 = pnand %p1792_p11, %p1789_p10 }
  0x3b   :  { %1797 = shalt.err (!%p1794_p12)
}
  0x3c   :  { %s1798_s23 = scalar_lea.vmem %s1915_s27, 2048  ;;  %p1803_p0 = scmp.lt.s32.totalorder %s1915_s27, %s1915_s27 }
  0x3d   :  { %p1799_p13 = scmp.ne.s32.totalorder %s1915_s27, %s1798_s23  ;;  %p1804_p1 = scmp.lt.s32.totalorder %s1798_s23, %s1798_s23 }
  0x3f   :  { %p1805_p2 = por %p1804_p1, %p1803_p0 }
  0x41   :  { %p1806_p3 = pnand %p1805_p2, %p1799_p13 }
  0x43   :  { %1809 = shalt.err (!%p1806_p3)
}
  0x44   :  { %64 = dma.hbm_to_vmem [thread:$0]  %s2263_s4, 2048, %s1915_s27, [#allocation11], %s1844_s1, %s1844_s1, %s1845_s21  }
  0x45   :  { %1832 = dma.done.wait [#allocation5], 512  }
  0x46   :  { %1833 = vsyncadd [#allocation5], 4294966784 }
  0x47   :  { %1834 = dma.done.wait [#allocation8], 10240  }
  0x48   :  { %1835 = vsyncadd [#allocation8], 4294957056 }
  0x49   :  { %1836 = dma.done.wait [#allocation11], 2048  }
  0x4a   :  { %1837 = vsyncadd [#allocation11], 4294965248  ;;  %v1848_v0 = vmov 0.0   ;;  %v84_v1 = vld [vmem:[#allocation7 + $0x8] sm:$0xff]  ;;  %v83_v6 = vld [vmem:[#allocation7] sm:$0xff]  ;;  %vm121_vm0 = vcmask 261120  }
  0x4b   :  { %198 = vmatprep.mubr.f32.mxu1 %v1848_v0  ;;  %460 = vmatprep.mubr.f32.mxu0 %v1848_v0  ;;  %v88_v2 = vld [vmem:[#allocation7 + $0x28] sm:$0xff]  ;;  %v87_v7 = vld [vmem:[#allocation7 + $0x20] sm:$0xff]  ;;  %v86_v24 = vld [vmem:[#allocation7 + $0x18] sm:$0xff]  ;;  %s1849_s25 = smov [#allocation12]  }
  0x4c   :  { %v329_v3 = vld [vmem:[#allocation9 + $0x8] sm:$0xff]  ;;  %v1312_v4 = vpack.c.bf16 %v88_v2, %v84_v1  ;;  %v1314_v9 = vpack.c.bf16 %v87_v7, %v83_v6  ;;  %v328_v10 = vld [vmem:[#allocation9] sm:$0xff]  ;;  %v90_v26 = vld [vmem:[#allocation7 + $0x38] sm:$0xff]  ;;  %s1219_s26 = sshll.u32 %s1849_s25, 4  ;;  %s1220_s26 = int_to_ptr.vmem [resolvable:$true] %s1219_s26 }
  0x4d   :  { %v333_v5 = vld [vmem:[#allocation9 + $0x28] sm:$0xff]  ;;  %v332_v11 = vld [vmem:[#allocation9 + $0x20] sm:$0xff]  ;;  %v1320_v29 = vpack.c.bf16 %v90_v26, %v86_v24  ;;  %v85_v31 = vld [vmem:[#allocation7 + $0x10] sm:$0xff]  ;;  %p1815_p5 = scmp.lt.s32.totalorder %s1220_s26, %s1220_s26 }
  0x4e   :  { %v1954_v8 = vpack.c.bf16 %v333_v5, %v329_v3  ;;  %v92_v12 = vld [vmem:[#allocation7 + $0x48] sm:$0xff]  ;;  %1313 = vmatprep.subr.bf16.mxu1 %v1312_v4  ;;  %v1956_v13 = vpack.c.bf16 %v332_v11, %v328_v10  ;;  %v91_v19 = vld [vmem:[#allocation7 + $0x40] sm:$0xff]  ;;  %v89_v32 = vld [vmem:[#allocation7 + $0x30] sm:$0xff] }
  0x4f   :  { %v96_v14 = vld [vmem:[#allocation7 + $0x68] sm:$0xff]  ;;  %1315 = vmatpush1.bf16.msra.mxu1 %v1314_v9  ;;  %v95_v20 = vld [vmem:[#allocation7 + $0x60] sm:$0xff]  ;;  %v1322_v35 = vpack.c.bf16 %v89_v32, %v85_v31  ;;  %v94_v43 = vld [vmem:[#allocation7 + $0x58] sm:$0xff] }
  0x50   :  { %v337_v15 = vld [vmem:[#allocation9 + $0x48] sm:$0xff]  ;;  %1329 = vmatprep.subr.bf16.mxu0 %v1954_v8  ;;  %v1316_v17 = vpack.c.bf16 %v96_v14, %v92_v12  ;;  %v336_v21 = vld [vmem:[#allocation9 + $0x40] sm:$0xff]  ;;  %v1318_v22 = vpack.c.bf16 %v95_v20, %v91_v19  ;;  %v98_v44 = vld [vmem:[#allocation7 + $0x78] sm:$0xff] }
  0x51   :  { %v341_v16 = vld [vmem:[#allocation9 + $0x68] sm:$0xff]  ;;  %1331 = vmatpush1.bf16.msra.mxu0 %v1956_v13  ;;  %v340_v23 = vld [vmem:[#allocation9 + $0x60] sm:$0xff]  ;;  %v1324_v45 = vpack.c.bf16 %v98_v44, %v94_v43  ;;  %v93_v48 = vld [vmem:[#allocation7 + $0x50] sm:$0xff] }
  0x52   :  { %v1959_v18 = vpack.c.bf16 %v341_v16, %v337_v15  ;;  %1317 = vmatprep.subr.bf16.mxu1 %v1316_v17  ;;  %v1963_v25 = vpack.c.bf16 %v340_v23, %v336_v21  ;;  %v345_v27 = vld [vmem:[#allocation9 + $0x88] sm:$0xff]  ;;  %v344_v33 = vld [vmem:[#allocation9 + $0x80] sm:$0xff]  ;;  %v97_v50 = vld [vmem:[#allocation7 + $0x70] sm:$0xff] }
  0x53   :  { %v349_v28 = vld [vmem:[#allocation9 + $0xa8] sm:$0xff]  ;;  %1319 = vmatpush1.bf16.msra.mxu1 %v1318_v22  ;;  %v1967_v34 = vld [vmem:[#allocation4] sm:$0xff]  ;;  %v1326_v52 = vpack.c.bf16 %v97_v50, %v93_v48  ;;  %v331_v56 = vld [vmem:[#allocation9 + $0x18] sm:$0xff] }
  0x54   :  { %1333 = vmatprep.subr.bf16.mxu0 %v1959_v18  ;;  %v1965_v30 = vpack.c.bf16 %v349_v28, %v345_v27  ;;  %v348_v36 = vld [vmem:[#allocation9 + $0xa0] sm:$0xff]  ;;  %v353_v37 = vld [vmem:[#allocation9 + $0xc8] sm:$0xff]  ;;  %1321 = vmatprep.subr.bf16.mxu1 %v1320_v29  ;;  %v335_v59 = vld [vmem:[#allocation9 + $0x38] sm:$0xff] }
  0x55   :  { %1335 = vmatpush1.bf16.msra.mxu0 %v1963_v25  ;;  %v1970_v38 = vpack.c.bf16 %v348_v36, %v344_v33  ;;  %v357_v39 = vld [vmem:[#allocation9 + $0xe8] sm:$0xff]  ;;  %v352_v40 = vld [vmem:[#allocation9 + $0xc0] sm:$0xff]  ;;  %v1989_v60 = vld [vmem:[#allocation4 + $0x10] sm:$0xff]  ;;  %v1991_v61 = vpack.c.bf16 %v335_v59, %v331_v56 }
  0x56   :  { %1337 = vmatprep.subr.bf16.mxu0 %v1965_v30  ;;  %v1973_v41 = vpack.c.bf16 %v357_v39, %v353_v37  ;;  %v356_v42 = vld [vmem:[#allocation9 + $0xe0] sm:$0xff]  ;;  %1233 = vmatmul.mubr.msk.f32.vlgmr.msra.gmra.mrb[0].mxu1 %vm121_vm0, %v1967_v34  ;;  %v361_v46 = vld [vmem:[#allocation9 + $0x108] sm:$0xff]  ;;  %v2003_v5 = vld [vmem:[#allocation4 + $0x18] sm:$0xff] }
  0x57   :  { %v365_v47 = vld [vmem:[#allocation9 + $0x128] sm:$0xff]  ;;  %1323 = vmatpush1.bf16.msra.mxu1 %v1322_v35  ;;  %204 = vmatprep.mubr.f32.mxu1 %v1848_v0  ;;  %v1981_v51 = vpack.c.bf16 %v356_v42, %v352_v40  ;;  %v360_v54 = vld [vmem:[#allocation9 + $0x100] sm:$0xff]  ;;  %v330_v7 = vld [vmem:[#allocation9 + $0x10] sm:$0xff] }
  0x58   :  { %v1978_v49 = vld [vmem:[#allocation4 + $0x8] sm:$0xff]  ;;  %1325 = vmatprep.subr.bf16.mxu1 %v1324_v45  ;;  %v1984_v53 = vpack.c.bf16 %v365_v47, %v361_v46  ;;  %v364_v55 = vld [vmem:[#allocation9 + $0x120] sm:$0xff]  ;;  %v334_v9 = vld [vmem:[#allocation9 + $0x30] sm:$0xff] }
  0x59   :  { %1339 = vmatpush1.bf16.msra.mxu0 %v1970_v38  ;;  %v369_v57 = vld [vmem:[#allocation9 + $0x148] sm:$0xff]  ;;  %v1994_v62 = vpack.c.bf16 %v364_v55, %v360_v54  ;;  %v368_v1 = vld [vmem:[#allocation9 + $0x140] sm:$0xff]  ;;  %v339_v14 = vld [vmem:[#allocation9 + $0x58] sm:$0xff]  ;;  %v2014_v19 = vpack.c.bf16 %v334_v9, %v330_v7 }
  0x5a   :  { %1341 = vmatprep.subr.bf16.mxu0 %v1973_v41  ;;  %1234 = vmatmul.mubr.msk.f32.gmra.mrb[2].mxu1 %vm121_vm0, %v1978_v49  ;;  %v373_v58 = vld [vmem:[#allocation9 + $0x168] sm:$0xff]  ;;  %v372_v2 = vld [vmem:[#allocation9 + $0x160] sm:$0xff]  ;;  %v343_v15 = vld [vmem:[#allocation9 + $0x78] sm:$0xff] }
  0x5b   :  { %210 = vmatprep.mubr.f32.mxu1 %v1848_v0  ;;  %1327 = vmatpush1.bf16.msra.mxu1 %v1326_v52  ;;  %v1997_v63 = vpack.c.bf16 %v373_v58, %v369_v57  ;;  %v377_v3 = vld [vmem:[#allocation9 + $0x188] sm:$0xff]  ;;  %v2006_v6 = vpack.c.bf16 %v372_v2, %v368_v1  ;;  %v376_v10 = vld [vmem:[#allocation9 + $0x180] sm:$0xff]  ;;  %v2019_v21 = vpack.c.bf16 %v343_v15, %v339_v14  ;;  %v338_v22 = vld [vmem:[#allocation9 + $0x50] sm:$0xff]  ;;  %v101_v15 = vlaneseq }
  0x5c   :  { %1361 = vmatprep.subr.bf16.mxu1 %v1991_v61  ;;  %v381_v4 = vld [vmem:[#allocation9 + $0x1a8] sm:$0xff]  ;;  %v380_v12 = vld [vmem:[#allocation9 + $0x1a0] sm:$0xff]  ;;  %v342_v23 = vld [vmem:[#allocation9 + $0x70] sm:$0xff] }
  0x5d   :  { %1343 = vmatpush1.bf16.msra.mxu0 %v1981_v51  ;;  %v2009_v11 = vpack.c.bf16 %v381_v4, %v377_v3  ;;  %v385_v16 = vld [vmem:[#allocation9 + $0x1c8] sm:$0xff]  ;;  %v2017_v20 = vpack.c.bf16 %v380_v12, %v376_v10  ;;  %v384_v24 = vld [vmem:[#allocation9 + $0x1c0] sm:$0xff]  ;;  %v347_v28 = vld [vmem:[#allocation9 + $0x98] sm:$0xff]  ;;  %v2027_v31 = vpack.c.bf16 %v342_v23, %v338_v22 }
  0x5e   :  { %1345 = vmatprep.subr.bf16.mxu0 %v1984_v53  ;;  %1235 = vmatmul.mubr.msk.f32.gmra.mrb[4].mxu1 %vm121_vm0, %v1989_v60  ;;  %v389_v17 = vld [vmem:[#allocation9 + $0x1e8] sm:$0xff]  ;;  %v388_v27 = vld [vmem:[#allocation9 + $0x1e0] sm:$0xff]  ;;  %v351_v29 = vld [vmem:[#allocation9 + $0xb8] sm:$0xff] }
  0x5f   :  { %216 = vmatprep.mubr.f32.mxu1 %v1848_v0  ;;  %v2022_v26 = vpack.c.bf16 %v389_v17, %v385_v16  ;;  %v2032_v32 = vpack.c.bf16 %v388_v27, %v384_v24  ;;  %v2034_v33 = vpack.c.bf16 %v351_v29, %v347_v28  ;;  %v346_v35 = vld [vmem:[#allocation9 + $0x90] sm:$0xff]  ;;  %v355_v37 = vld [vmem:[#allocation9 + $0xd8] sm:$0xff]  ;;  %v102_v16 = vshrl.u32 %v101_v15, 7  ;;  %v99_v22 = vld [vmem:[%s2262_s3] sm:$0xf] }
  0x60   :  { %v350_v36 = vld [vmem:[#allocation9 + $0xb0] sm:$0xff]  ;;  %v363_v44 = vld [vmem:[#allocation9 + $0x118] sm:$0xff] }
  0x61   :  { %1347 = vmatpush1.bf16.msra.mxu0 %v1994_v62  ;;  %v2040_v39 = vpack.c.bf16 %v350_v36, %v346_v35  ;;  %v354_v42 = vld [vmem:[#allocation9 + $0xd0] sm:$0xff]  ;;  %v367_v45 = vld [vmem:[#allocation9 + $0x138] sm:$0xff]  ;;  %v103_v17 = vsub.s32 0, %v102_v16  ;;  %v107_v24 = vsub.s32 1, %v102_v16  ;;  %v115_v15 = vsub.s32 3, %v102_v16 }
  0x62   :  { %1349 = vmatprep.subr.bf16.mxu0 %v1997_v63  ;;  %1236 = vmatmul.mubr.msk.f32.gmra.mrb[6].mxu1 %vm121_vm0, %v2003_v5  ;;  %v358_v43 = vld [vmem:[#allocation9 + $0xf0] sm:$0xff]  ;;  %v2055_v47 = vpack.c.bf16 %v367_v45, %v363_v44  ;;  %v371_v50 = vld [vmem:[#allocation9 + $0x158] sm:$0xff] }
  0x63   :  { %287 = vmatprep.mubr.f32.mxu1 %v1848_v0  ;;  %v2052_v46 = vpack.c.bf16 %v358_v43, %v354_v42  ;;  %v362_v48 = vld [vmem:[#allocation9 + $0x110] sm:$0xff]  ;;  %v375_v52 = vld [vmem:[#allocation9 + $0x178] sm:$0xff]  ;;  %v104_v28 = vrot.slane %v99_v22, %v103_v17  ;;  %v108_v29 = vrot.slane %v99_v22, %v107_v24 }
  0x64   :  { %v2068_v55 = vpack.c.bf16 %v375_v52, %v371_v50  ;;  %v370_v56 = vld [vmem:[#allocation9 + $0x150] sm:$0xff]  ;;  %v379_v58 = vld [vmem:[#allocation9 + $0x198] sm:$0xff] }
  0x65   :  { %1351 = vmatpush1.bf16.msra.mxu0 %v2006_v6  ;;  %v374_v57 = vld [vmem:[#allocation9 + $0x170] sm:$0xff]  ;;  %v383_v59 = vld [vmem:[#allocation9 + $0x1b8] sm:$0xff] }
  0x66   :  { %1353 = vmatprep.subr.bf16.mxu0 %v2009_v11  ;;  %1237 = vmatmul.mubr.msk.f32.vlgmr.msra.gmra.mrb[8].mxu1 %vm121_vm0, %v1967_v34  ;;  %v359_v34 = vld [vmem:[#allocation9 + $0xf8] sm:$0xff]  ;;  %v2076_v1 = vpack.c.bf16 %v383_v59, %v379_v58  ;;  %v378_v2 = vld [vmem:[#allocation9 + $0x190] sm:$0xff] }
  0x67   :  { %1363 = vmatpush1.bf16.msra.mxu1 %v2014_v19  ;;  %293 = vmatprep.mubr.f32.mxu1 %v1848_v0  ;;  %v2045_v40 = vpack.c.bf16 %v359_v34, %v355_v37  ;;  %v382_v3 = vld [vmem:[#allocation9 + $0x1b0] sm:$0xff]  ;;  %v387_v4 = vld [vmem:[#allocation9 + $0x1d8] sm:$0xff] }
  0x68   :  { %1365 = vmatprep.subr.bf16.mxu1 %v2019_v21  ;;  %v2081_v7 = vpack.c.bf16 %v382_v3, %v378_v2  ;;  %v386_v10 = vld [vmem:[#allocation9 + $0x1d0] sm:$0xff] }
  0x69   :  { %1355 = vmatpush1.bf16.msra.mxu0 %v2017_v20  ;;  %v390_v12 = vld [vmem:[#allocation9 + $0x1f0] sm:$0xff] }
  0x6a   :  { %1357 = vmatprep.subr.bf16.mxu0 %v2022_v26  ;;  %1238 = vmatmul.mubr.msk.f32.gmra.mrb[10].mxu1 %vm121_vm0, %v1978_v49  ;;  %v366_v49 = vld [vmem:[#allocation9 + $0x130] sm:$0xff]  ;;  %v2089_v14 = vpack.c.bf16 %v390_v12, %v386_v10  ;;  %v111_v10 = vsub.s32 2, %v102_v16 }
  0x6b   :  { %1367 = vmatpush1.bf16.msra.mxu1 %v2027_v31  ;;  %299 = vmatprep.mubr.f32.mxu1 %v1848_v0  ;;  %v2064_v54 = vpack.c.bf16 %v366_v49, %v362_v48 }
  0x6c   :  { %1369 = vmatprep.subr.bf16.mxu1 %v2034_v33 }
  0x6d   :  { %1359 = vmatpush1.bf16.msra.mxu0 %v2032_v32 }
  0x6e   :  { %1393 = vmatprep.subr.bf16.mxu0 %v1954_v8  ;;  %1239 = vmatmul.mubr.msk.f32.gmra.mrb[12].mxu1 %vm121_vm0, %v1989_v60  ;;  %v2073_v60 = vpack.c.bf16 %v374_v57, %v370_v56 }
  0x6f   :  { %1371 = vmatpush1.bf16.msra.mxu1 %v2040_v39  ;;  %305 = vmatprep.mubr.f32.mxu1 %v1848_v0 }
  0x70   :  { %461 = vmatmul.mubr.f32.vlgmr.msra.gmra.mrb[0].mxu0 %v1848_v0  ;;  %1373 = vmatprep.subr.bf16.mxu1 %v2045_v40 }
  0x71   :  { %1395 = vmatpush1.bf16.msra.mxu0 %v1956_v13  ;;  %636 = vmatprep.mubr.f32.mxu0 %v1848_v0 }
  0x72   :  { %1240 = vmatmul.mubr.msk.f32.gmra.mrb[14].mxu1 %vm121_vm0, %v2003_v5  ;;  %1397 = vmatprep.subr.bf16.mxu0 %v1959_v18  ;;  %v391_v5 = vld [vmem:[#allocation9 + $0x1f8] sm:$0xff] }
  0x73   :  { %1375 = vmatpush1.bf16.msra.mxu1 %v2052_v46  ;;  %531 = vmatprep.mubr.f32.mxu1 %v1848_v0  ;;  %v2084_v9 = vpack.c.bf16 %v391_v5, %v387_v4 }
  0x74   :  { %1377 = vmatprep.subr.bf16.mxu1 %v2055_v47 }
  0x75   :  { %1399 = vmatpush1.bf16.msra.mxu0 %v1963_v25 }
  0x76   :  { %1401 = vmatprep.subr.bf16.mxu0 %v1965_v30 }
  0x77   :  { %1379 = vmatpush1.bf16.msra.mxu1 %v2064_v54 }
  0x78   :  { %1381 = vmatprep.subr.bf16.mxu1 %v2068_v55 }
  0x79   :  { %1403 = vmatpush1.bf16.msra.mxu0 %v1970_v38 }
  0x7a   :  { %1405 = vmatprep.subr.bf16.mxu0 %v1973_v41 }
  0x7b   :  { %1383 = vmatpush1.bf16.msra.mxu1 %v2073_v60 }
  0x7c   :  { %1385 = vmatprep.subr.bf16.mxu1 %v2076_v1 }
  0x7d   :  { %1407 = vmatpush1.bf16.msra.mxu0 %v1981_v51 }
  0x7e   :  { %1409 = vmatprep.subr.bf16.mxu0 %v1984_v53 }
  0x7f   :  { %1387 = vmatpush1.bf16.msra.mxu1 %v2081_v7 }
  0x80   :  { %1389 = vmatprep.subr.bf16.mxu1 %v2084_v9 }
  0x81   :  { %1411 = vmatpush1.bf16.msra.mxu0 %v1994_v62 }
  0x82   :  { %1413 = vmatprep.subr.bf16.mxu0 %v1997_v63 }
  0x83   :  { %1391 = vmatpush1.bf16.msra.mxu1 %v2089_v14 }
  0x84   :  { %1425 = vmatprep.subr.bf16.mxu1 %v1991_v61 }
  0x85   :  { %1415 = vmatpush1.bf16.msra.mxu0 %v2006_v6 }
  0x86   :  { %532 = vmatmul.mubr.f32.vlgmr.msra.gmra.mrb[8].mxu1 %v1848_v0  ;;  %1417 = vmatprep.subr.bf16.mxu0 %v2009_v11 }
  0x87   :  { %1427 = vmatpush1.bf16.msra.mxu1 %v2014_v19  ;;  %707 = vmatprep.mubr.f32.mxu1 %v1848_v0 }
  0x88   :  { %1429 = vmatprep.subr.bf16.mxu1 %v2019_v21 }
  0x89   :  { %1419 = vmatpush1.bf16.msra.mxu0 %v2017_v20 }
  0x8a   :  { %1421 = vmatprep.subr.bf16.mxu0 %v2022_v26 }
  0x8b   :  { %1431 = vmatpush1.bf16.msra.mxu1 %v2027_v31 }
  0x8c   :  { %1433 = vmatprep.subr.bf16.mxu1 %v2034_v33 }
  0x8d   :  { %1423 = vmatpush1.bf16.msra.mxu0 %v2032_v32 }
  0x8e   :  { %1457 = vmatprep.subr.bf16.mxu0 %v1954_v8 }
  0x8f   :  { %1435 = vmatpush1.bf16.msra.mxu1 %v2040_v39 }
  0x90   :  { %1437 = vmatprep.subr.bf16.mxu1 %v2045_v40 }
  0x93   :  { %1439 = vmatpush1.bf16.msra.mxu1 %v2052_v46 }
  0x94   :  { %1441 = vmatprep.subr.bf16.mxu1 %v2055_v47 }
  0x97   :  { %1443 = vmatpush1.bf16.msra.mxu1 %v2064_v54 }
  0x98   :  { %1445 = vmatprep.subr.bf16.mxu1 %v2068_v55 }
  0x9b   :  { %1447 = vmatpush1.bf16.msra.mxu1 %v2073_v60 }
  0x9c   :  { %1449 = vmatprep.subr.bf16.mxu1 %v2076_v1 }
  0x9f   :  { %1451 = vmatpush1.bf16.msra.mxu1 %v2081_v7 }
  0xa0   :  { %1453 = vmatprep.subr.bf16.mxu1 %v2084_v9 }
  0xa3   :  { %1455 = vmatpush1.bf16.msra.mxu1 %v2089_v14 }
  0xa4   :  { %1489 = vmatprep.subr.bf16.mxu1 %v1991_v61 }
 0x129   :  { %v200_v23 = vpop.f32.mrb[0].mxu1 }
 0x12a   :  { %v202_v27 = vpop.f32.mrb[1].mxu1  ;;  %v201_v56 = vadd.f32 %v200_v23, %v104_v28 }
 0x12b   :  { %v203_v57 = vadd.f32 %v202_v27, %v108_v29 }
 0x12d   :  { %v206_v35 = vpop.f32.mrb[2].mxu1 }
 0x12e   :  { %v2123_v36 = vadd.f32 %v206_v35, %v104_v28  ;;  %v208_v37 = vpop.f32.mrb[3].mxu1  ;;  %v2135_v35 = vrot.slane %v99_v22, %v111_v10 }
 0x12f   :  { %v2125_v34 = vadd.f32 %v208_v37, %v108_v29 }
 0x131   :  { %v212_v42 = vpop.f32.mrb[4].mxu1 }
 0x132   :  { %v2127_v43 = vadd.f32 %v212_v42, %v104_v28  ;;  %v214_v44 = vpop.f32.mrb[5].mxu1  ;;  %v2137_v42 = vrot.slane %v99_v22, %v115_v15 }
 0x133   :  { %v2129_v45 = vadd.f32 %v214_v44, %v108_v29 }
 0x135   :  { %v218_v48 = vpop.f32.mrb[6].mxu1 }
 0x136   :  { %v2131_v49 = vadd.f32 %v218_v48, %v104_v28  ;;  %v220_v50 = vpop.f32.mrb[7].mxu1 }
 0x137   :  { %v2133_v52 = vadd.f32 %v220_v50, %v108_v29 }
 0x143   :  { %v462_v58 = vpop.f32.mrb[0].mxu0 }
 0x144   :  { %v538_v59 = vadd.f32 %v462_v58, %v201_v56  ;;  %v464_v2 = vpop.f32.mrb[1].mxu0 }
 0x145   :  { %v539_v3 = vadd.f32 %v464_v2, %v203_v57 }
 0x146   :  { %v1241_v4 = vmul.f32 -1.442695, %v538_v59 }
 0x147   :  { %v1242_v5 = vmul.f32 -1.442695, %v539_v3 }
 0x149   :  { %1658 = vpow2.f32 %v1242_v5 }
 0x14a   :  { %1660 = vpow2.f32 %v1241_v4 }
 0x153   :  { %v1659_v12 = vpop.eup %1658 }
 0x154   :  { %v1661_v17 = vpop.eup %1660  ;;  %v551_v24 = vadd.f32 1.0, %v1659_v12 }
 0x155   :  { %v545_v37 = vadd.f32 1.0, %v1661_v17 }
 0x156   :  { %1662 = vrcp.f32 %v551_v24 }
 0x157   :  { %1664 = vrcp.f32 %v545_v37 }
 0x159   :  { %v533_v23 = vpop.f32.mrb[8].mxu1 }
 0x15a   :  { %v1632_v27 = vadd.f32 %v533_v23, %v2135_v35  ;;  %v535_v28 = vpop.f32.mrb[9].mxu1 }
 0x15b   :  { %v1633_v29 = vadd.f32 %v535_v28, %v2137_v42 }
 0x15c   :  { %1666 = vtanh.f32 %v1632_v27 }
 0x15d   :  { %v1243_v44 = vmul.f32 -1.442695, %v1633_v29 }
 0x15f   :  { %1668 = vpow2.f32 %v1243_v44 }
 0x160   :  { %v1663_v48 = vpop.eup %1662 }
 0x161   :  { %v1665_v16 = vpop.eup %1664  ;;  %v561_v56 = vmul.f32 0.0, %v1663_v48 }
 0x166   :  { %v1667_v50 = vpop.eup %1666 }
 0x167   :  { %v562_v57 = vmul.f32 %v1667_v50, %v1665_v16 }
 0x169   :  { %v1669_v58 = vpop.eup %1668  ;;  %v2141_v59 = vadd.f32 %v562_v57, %v561_v56 }
 0x16a   :  { %v558_v22 = vadd.f32 1.0, %v1669_v58 }
 0x16b   :  { %1670 = vtanh.f32 %v2141_v59 }
 0x16c   :  { %1672 = vrcp.f32 %v558_v22 }
 0x175   :  { %v1671_v2 = vpop.eup %1670 }
 0x176   :  { %v1673_v3 = vpop.eup %1672 }
 0x177   :  { %v2144_v4 = vmul.f32 %v1673_v3, %v1671_v2 }
 0x179   :  { %637 = vmatmul.mubr.f32.vlgmr.msra.gmra.mrb[2].mxu0 %v2144_v4  ;;  %708 = vmatmul.mubr.f32.vlgmr.msra.gmra.mrb[10].mxu1 %v2144_v4 }
 0x17a   :  { %1459 = vmatpush1.bf16.msra.mxu0 %v1956_v13  ;;  %1491 = vmatpush1.bf16.msra.mxu1 %v2014_v19 }
 0x17b   :  { %1461 = vmatprep.subr.bf16.mxu0 %v1959_v18  ;;  %1493 = vmatprep.subr.bf16.mxu1 %v2019_v21 }
 0x17c   :  { %813 = vmatprep.mubr.f32.mxu0 %v1848_v0  ;;  %884 = vmatprep.mubr.f32.mxu1 %v1848_v0 }
 0x17e   :  { %1463 = vmatpush1.bf16.msra.mxu0 %v1963_v25  ;;  %1495 = vmatpush1.bf16.msra.mxu1 %v2027_v31 }
 0x17f   :  { %1465 = vmatprep.subr.bf16.mxu0 %v1965_v30  ;;  %1497 = vmatprep.subr.bf16.mxu1 %v2034_v33 }
 0x182   :  { %1467 = vmatpush1.bf16.msra.mxu0 %v1970_v38  ;;  %1499 = vmatpush1.bf16.msra.mxu1 %v2040_v39 }
 0x183   :  { %1469 = vmatprep.subr.bf16.mxu0 %v1973_v41  ;;  %1501 = vmatprep.subr.bf16.mxu1 %v2045_v40 }
 0x186   :  { %1471 = vmatpush1.bf16.msra.mxu0 %v1981_v51  ;;  %1503 = vmatpush1.bf16.msra.mxu1 %v2052_v46 }
 0x187   :  { %1473 = vmatprep.subr.bf16.mxu0 %v1984_v53  ;;  %1505 = vmatprep.subr.bf16.mxu1 %v2055_v47 }
 0x18a   :  { %1475 = vmatpush1.bf16.msra.mxu0 %v1994_v62  ;;  %1507 = vmatpush1.bf16.msra.mxu1 %v2064_v54 }
 0x18b   :  { %1477 = vmatprep.subr.bf16.mxu0 %v1997_v63  ;;  %1509 = vmatprep.subr.bf16.mxu1 %v2068_v55 }
 0x18e   :  { %1479 = vmatpush1.bf16.msra.mxu0 %v2006_v6  ;;  %1511 = vmatpush1.bf16.msra.mxu1 %v2073_v60 }
 0x18f   :  { %1481 = vmatprep.subr.bf16.mxu0 %v2009_v11  ;;  %1513 = vmatprep.subr.bf16.mxu1 %v2076_v1 }
 0x192   :  { %1483 = vmatpush1.bf16.msra.mxu0 %v2017_v20  ;;  %1515 = vmatpush1.bf16.msra.mxu1 %v2081_v7 }
 0x193   :  { %1485 = vmatprep.subr.bf16.mxu0 %v2022_v26  ;;  %1517 = vmatprep.subr.bf16.mxu1 %v2084_v9 }
 0x196   :  { %1487 = vmatpush1.bf16.msra.mxu0 %v2032_v32  ;;  %1519 = vmatpush1.bf16.msra.mxu1 %v2089_v14 }
 0x197   :  { %1521 = vmatprep.subr.bf16.mxu0 %v1954_v8  ;;  %1553 = vmatprep.subr.bf16.mxu1 %v1991_v61 }
 0x24c   :  { %v638_v5 = vpop.f32.mrb[2].mxu0  ;;  %v709_v10 = vpop.f32.mrb[10].mxu1 }
 0x24d   :  { %v714_v12 = vadd.f32 %v638_v5, %v2123_v36  ;;  %v640_v15 = vpop.f32.mrb[3].mxu0  ;;  %v711_v17 = vpop.f32.mrb[11].mxu1  ;;  %v1634_v29 = vadd.f32 %v709_v10, %v2135_v35 }
 0x24e   :  { %v715_v24 = vadd.f32 %v640_v15, %v2125_v34  ;;  %v1635_v27 = vadd.f32 %v711_v17, %v2137_v42  ;;  %v1109_v15 = vld [vmem:[#allocation10 + $0x38] sm:$0xff] }
 0x24f   :  { %v1244_v37 = vmul.f32 -1.442695, %v714_v12  ;;  %v1108_v12 = vld [vmem:[#allocation10 + $0x30] sm:$0xff] }
 0x250   :  { %v1245_v23 = vmul.f32 -1.442695, %v715_v24  ;;  %v1246_v28 = vmul.f32 -1.442695, %v1635_v27  ;;  %v1596_v17 = vpack.c.bf16 %v1109_v15, %v1108_v12  ;;  %v1110_v24 = vld [vmem:[#allocation10 + $0x40] sm:$0xff]  ;;  %v1112_v27 = vld [vmem:[#allocation10 + $0x50] sm:$0xff] }
 0x251   :  { %1674 = vpow2.f32 %v1244_v37  ;;  %v1111_v37 = vld [vmem:[#allocation10 + $0x48] sm:$0xff] }
 0x252   :  { %1676 = vpow2.f32 %v1245_v23  ;;  %v1600_v23 = vpack.c.bf16 %v1111_v37, %v1110_v24 }
 0x253   :  { %1678 = vpow2.f32 %v1246_v28  ;;  %v1113_v28 = vld [vmem:[#allocation10 + $0x58] sm:$0xff] }
 0x254   :  { %1680 = vtanh.f32 %v1634_v29  ;;  %v1604_v29 = vpack.c.bf16 %v1113_v28, %v1112_v27 }
 0x25b   :  { %v1675_v8 = vpop.eup %1674 }
 0x25c   :  { %v1677_v44 = vpop.eup %1676  ;;  %v721_v61 = vadd.f32 1.0, %v1675_v8  ;;  %v1114_v8 = vld [vmem:[#allocation10 + $0x60] sm:$0xff] }
 0x25d   :  { %v727_v48 = vadd.f32 1.0, %v1677_v44  ;;  %v1679_v36 = vpop.eup %1678  ;;  %v1115_v44 = vld [vmem:[#allocation10 + $0x68] sm:$0xff] }
 0x25e   :  { %1682 = vrcp.f32 %v721_v61  ;;  %v1681_v16 = vpop.eup %1680  ;;  %v734_v57 = vadd.f32 1.0, %v1679_v36  ;;  %v1116_v61 = vld [vmem:[#allocation10 + $0x70] sm:$0xff] }
 0x25f   :  { %1684 = vrcp.f32 %v727_v48  ;;  %v1117_v48 = vld [vmem:[#allocation10 + $0x78] sm:$0xff] }
 0x260   :  { %1686 = vrcp.f32 %v734_v57  ;;  %v1612_v36 = vpack.c.bf16 %v1117_v48, %v1116_v61 }
 0x268   :  { %v1683_v34 = vpop.eup %1682 }
 0x269   :  { %v1685_v50 = vpop.eup %1684  ;;  %v738_v56 = vmul.f32 %v1683_v34, %v1681_v16 }
 0x26a   :  { %v737_v58 = vmul.f32 %v1685_v50, %v2141_v59  ;;  %v1687_v2 = vpop.eup %1686  ;;  %v1107_v59 = vld [vmem:[#allocation10 + $0x28] sm:$0xff] }
 0x26c   :  { %v2187_v22 = vadd.f32 %v738_v56, %v737_v58 }
 0x26e   :  { %1688 = vtanh.f32 %v2187_v22 }
 0x278   :  { %v1689_v3 = vpop.eup %1688 }
 0x279   :  { %v2190_v5 = vmul.f32 %v1689_v3, %v1687_v2 }
 0x27b   :  { %814 = vmatmul.mubr.f32.vlgmr.msra.gmra.mrb[4].mxu0 %v2190_v5  ;;  %885 = vmatmul.mubr.f32.vlgmr.msra.gmra.mrb[12].mxu1 %v2190_v5 }
 0x27c   :  { %1523 = vmatpush1.bf16.msra.mxu0 %v1956_v13  ;;  %1555 = vmatpush1.bf16.msra.mxu1 %v2014_v19  ;;  %v1103_v13 = vld [vmem:[#allocation10 + $0x8] sm:$0xff] }
 0x27d   :  { %1525 = vmatprep.subr.bf16.mxu0 %v1959_v18  ;;  %1557 = vmatprep.subr.bf16.mxu1 %v2019_v21 }
 0x27e   :  { %990 = vmatprep.mubr.f32.mxu0 %v1848_v0  ;;  %1061 = vmatprep.mubr.f32.mxu1 %v1848_v0  ;;  %v1102_v0 = vld [vmem:[#allocation10] sm:$0xff] }
 0x27f   :  { %v1584_v18 = vpack.c.bf16 %v1103_v13, %v1102_v0 }
 0x280   :  { %1527 = vmatpush1.bf16.msra.mxu0 %v1963_v25  ;;  %1559 = vmatpush1.bf16.msra.mxu1 %v2027_v31 }
 0x281   :  { %1529 = vmatprep.subr.bf16.mxu0 %v1965_v30  ;;  %1561 = vmatprep.subr.bf16.mxu1 %v2034_v33 }
 0x284   :  { %1531 = vmatpush1.bf16.msra.mxu0 %v1970_v38  ;;  %1563 = vmatpush1.bf16.msra.mxu1 %v2040_v39 }
 0x285   :  { %1533 = vmatprep.subr.bf16.mxu0 %v1973_v41  ;;  %1565 = vmatprep.subr.bf16.mxu1 %v2045_v40 }
 0x288   :  { %1535 = vmatpush1.bf16.msra.mxu0 %v1981_v51  ;;  %1567 = vmatpush1.bf16.msra.mxu1 %v2052_v46 }
 0x289   :  { %1537 = vmatprep.subr.bf16.mxu0 %v1984_v53  ;;  %1569 = vmatprep.subr.bf16.mxu1 %v2055_v47 }
 0x28c   :  { %1539 = vmatpush1.bf16.msra.mxu0 %v1994_v62  ;;  %1571 = vmatpush1.bf16.msra.mxu1 %v2064_v54 }
 0x28d   :  { %1541 = vmatprep.subr.bf16.mxu0 %v1997_v63  ;;  %1573 = vmatprep.subr.bf16.mxu1 %v2068_v55 }
 0x290   :  { %1543 = vmatpush1.bf16.msra.mxu0 %v2006_v6  ;;  %1575 = vmatpush1.bf16.msra.mxu1 %v2073_v60  ;;  %v1104_v60 = vld [vmem:[#allocation10 + $0x10] sm:$0xff] }
 0x291   :  { %1545 = vmatprep.subr.bf16.mxu0 %v2009_v11  ;;  %1577 = vmatprep.subr.bf16.mxu1 %v2076_v1  ;;  %v1105_v1 = vld [vmem:[#allocation10 + $0x18] sm:$0xff] }
 0x294   :  { %1547 = vmatpush1.bf16.msra.mxu0 %v2017_v20  ;;  %1579 = vmatpush1.bf16.msra.mxu1 %v2081_v7 }
 0x295   :  { %1549 = vmatprep.subr.bf16.mxu0 %v2022_v26  ;;  %1581 = vmatprep.subr.bf16.mxu1 %v2084_v9 }
 0x298   :  { %1551 = vmatpush1.bf16.msra.mxu0 %v2032_v32  ;;  %1583 = vmatpush1.bf16.msra.mxu1 %v2089_v14 }
 0x299   :  { %1585 = vmatprep.subr.bf16.mxu0 %v1584_v18 }
 0x34e   :  { %v815_v25 = vpop.f32.mrb[4].mxu0  ;;  %v886_v30 = vpop.f32.mrb[12].mxu1 }
 0x34f   :  { %v891_v38 = vadd.f32 %v815_v25, %v2127_v43  ;;  %v817_v41 = vpop.f32.mrb[5].mxu0  ;;  %v888_v51 = vpop.f32.mrb[13].mxu1  ;;  %v1636_v19 = vadd.f32 %v886_v30, %v2135_v35  ;;  %v1588_v43 = vpack.c.bf16 %v1105_v1, %v1104_v60 }
 0x350   :  { %v892_v53 = vadd.f32 %v817_v41, %v2129_v45  ;;  %v1637_v6 = vadd.f32 %v888_v51, %v2137_v42  ;;  %v1106_v45 = vld [vmem:[#allocation10 + $0x20] sm:$0xff] }
 0x351   :  { %v1247_v62 = vmul.f32 -1.442695, %v891_v38  ;;  %v1592_v10 = vpack.c.bf16 %v1107_v59, %v1106_v45 }
 0x352   :  { %v1248_v63 = vmul.f32 -1.442695, %v892_v53  ;;  %v1249_v11 = vmul.f32 -1.442695, %v1637_v6 }
 0x353   :  { %1690 = vpow2.f32 %v1247_v62 }
 0x354   :  { %1692 = vpow2.f32 %v1248_v63 }
 0x355   :  { %1694 = vpow2.f32 %v1249_v11 }
 0x356   :  { %1696 = vtanh.f32 %v1636_v19 }
 0x35d   :  { %v1691_v20 = vpop.eup %1690 }
 0x35e   :  { %v1693_v21 = vpop.eup %1692  ;;  %v898_v26 = vadd.f32 1.0, %v1691_v20 }
 0x35f   :  { %v904_v31 = vadd.f32 1.0, %v1693_v21  ;;  %v1695_v32 = vpop.eup %1694 }
 0x360   :  { %1698 = vrcp.f32 %v898_v26  ;;  %v1697_v33 = vpop.eup %1696  ;;  %v911_v47 = vadd.f32 1.0, %v1695_v32 }
 0x361   :  { %1700 = vrcp.f32 %v904_v31 }
 0x362   :  { %1702 = vrcp.f32 %v911_v47 }
 0x36a   :  { %v1699_v39 = vpop.eup %1698 }
 0x36b   :  { %v1701_v40 = vpop.eup %1700  ;;  %v915_v46 = vmul.f32 %v1699_v39, %v1697_v33 }
 0x36c   :  { %v914_v54 = vmul.f32 %v1701_v40, %v2187_v22  ;;  %v1703_v7 = vpop.eup %1702 }
 0x36e   :  { %v2231_v55 = vadd.f32 %v915_v46, %v914_v54 }
 0x370   :  { %1704 = vtanh.f32 %v2231_v55 }
 0x37a   :  { %v1705_v9 = vpop.eup %1704 }
 0x37b   :  { %v918_v14 = vmul.f32 %v1705_v9, %v1703_v7 }
 0x37d   :  { %991 = vmatmul.mubr.f32.vlgmr.msra.gmra.mrb[6].mxu0 %v918_v14  ;;  %1062 = vmatmul.mubr.f32.vlgmr.msra.gmra.mrb[14].mxu1 %v918_v14 }
 0x37e   :  { %1587 = vmatpush3.bf16.msra.mxu0 %v1584_v18  ;;  %1306 = vmatprep.mubr.f32.mxu0 %v2144_v4  ;;  %v1608_v4 = vpack.c.bf16 %v1115_v44, %v1114_v8 }
 0x37f   :  { %1589 = vmatprep.subr.bf16.mxu0 %v1588_v43 }
 0x382   :  { %1591 = vmatpush3.bf16.msra.mxu0 %v1588_v43 }
 0x383   :  { %1593 = vmatprep.subr.bf16.mxu0 %v1592_v10 }
 0x386   :  { %1595 = vmatpush3.bf16.msra.mxu0 %v1592_v10 }
 0x387   :  { %1597 = vmatprep.subr.bf16.mxu0 %v1596_v17 }
 0x38a   :  { %1599 = vmatpush3.bf16.msra.mxu0 %v1596_v17 }
 0x38b   :  { %1601 = vmatprep.subr.bf16.mxu0 %v1600_v23 }
 0x38e   :  { %1603 = vmatpush3.bf16.msra.mxu0 %v1600_v23 }
 0x38f   :  { %1605 = vmatprep.subr.bf16.mxu0 %v1604_v29 }
 0x392   :  { %1607 = vmatpush3.bf16.msra.mxu0 %v1604_v29 }
 0x393   :  { %1609 = vmatprep.subr.bf16.mxu0 %v1608_v4 }
 0x396   :  { %1611 = vmatpush3.bf16.msra.mxu0 %v1608_v4 }
 0x397   :  { %1613 = vmatprep.subr.bf16.mxu0 %v1612_v36 }
 0x39a   :  { %1615 = vmatpush3.bf16.msra.mxu0 %v1612_v36 }
 0x39d   :  { %1307 = vmatmul.mubr.f32.vlgmr.msra.gmra.mrb[8].mxu0 %v2190_v5 }
 0x39e   :  { %1309 = vmatprep.mubr.f32.mxu0 %v918_v14 }
 0x450   :  { %v992_v16 = vpop.f32.mrb[6].mxu0  ;;  %v1063_v34 = vpop.f32.mrb[14].mxu1 }
 0x451   :  { %v1068_v50 = vadd.f32 %v992_v16, %v2131_v49  ;;  %v994_v56 = vpop.f32.mrb[7].mxu0  ;;  %v1065_v57 = vpop.f32.mrb[15].mxu1  ;;  %v1638_v13 = vadd.f32 %v1063_v34, %v2135_v35  ;;  %v1253_v35 = vld [vmem:[%s2264_s5] ss:$0 sm:$0xff]  ;;  %s1810_s5 = scalar_lea.vmem %s1220_s26, 512 }
 0x452   :  { %v1069_v58 = vadd.f32 %v994_v56, %v2133_v52  ;;  %v1639_v3 = vadd.f32 %v1065_v57, %v2137_v42  ;;  %p1811_p4 = scmp.ne.s32.totalorder %s1220_s26, %s1810_s5  ;;  %p1816_p6 = scmp.lt.s32.totalorder %s1810_s5, %s1810_s5 }
 0x453   :  { %v1250_v22 = vmul.f32 -1.442695, %v1068_v50 }
 0x454   :  { %v1251_v2 = vmul.f32 -1.442695, %v1069_v58  ;;  %v1252_v0 = vmul.f32 -1.442695, %v1639_v3  ;;  %p1817_p7 = por %p1816_p6, %p1815_p5 }
 0x455   :  { %1706 = vpow2.f32 %v1250_v22 }
 0x456   :  { %1708 = vpow2.f32 %v1251_v2  ;;  %p1818_p8 = pnand %p1817_p7, %p1811_p4 }
 0x457   :  { %1710 = vpow2.f32 %v1252_v0 }
 0x458   :  { %1712 = vtanh.f32 %v1638_v13 }
 0x45f   :  { %v1707_v18 = vpop.eup %1706 }
 0x460   :  { %v1709_v5 = vpop.eup %1708  ;;  %v1075_v25 = vadd.f32 1.0, %v1707_v18 }
 0x461   :  { %v1081_v30 = vadd.f32 1.0, %v1709_v5  ;;  %v1711_v49 = vpop.eup %1710 }
 0x462   :  { %1714 = vrcp.f32 %v1075_v25  ;;  %v1713_v38 = vpop.eup %1712  ;;  %v1088_v53 = vadd.f32 1.0, %v1711_v49 }
 0x463   :  { %1716 = vrcp.f32 %v1081_v30 }
 0x464   :  { %1718 = vrcp.f32 %v1088_v53 }
 0x46c   :  { %v1715_v52 = vpop.eup %1714 }
 0x46d   :  { %v1717_v41 = vpop.eup %1716  ;;  %v1092_v51 = vmul.f32 %v1715_v52, %v1713_v38 }
 0x46e   :  { %v1091_v62 = vmul.f32 %v1717_v41, %v2231_v55  ;;  %v1719_v20 = vpop.eup %1718 }
 0x470   :  { %v1308_v42 = vpop.f32.mrb[8].mxu0  ;;  %v1093_v63 = vadd.f32 %v1092_v51, %v1091_v62 }
 0x471   :  { %v1197_v6 = vadd.f32 %v1308_v42, %v1253_v35  ;;  %v1191_v11 = vpop.f32.mrb[9].mxu0 }
 0x472   :  { %v1192_v19 = vadd.f32 %v1253_v35, %v1191_v11  ;;  %1720 = vtanh.f32 %v1093_v63 }
 0x473   :  { %1211 = vst [vmem:[#allocation12 + $0x8] sm:$0xff] %v1197_v6 }
 0x474   :  { %1210 = vst [vmem:[#allocation12] sm:$0xff] %v1192_v19 }
 0x47c   :  { %v1721_v21 = vpop.eup %1720 }
 0x47d   :  { %v1095_v26 = vmul.f32 %v1721_v21, %v1719_v20 }
 0x47f   :  { %1310 = vmatmul.mubr.f32.gmra.mrb[10].mxu0 %v1095_v26 }
 0x552   :  { %v1311_v31 = vpop.f32.mrb[10].mxu0 }
 0x553   :  { %v1207_v32 = vadd.f32 %v1311_v31, %v1253_v35  ;;  %v1201_v33 = vpop.f32.mrb[11].mxu0 }
 0x554   :  { %v1202_v39 = vadd.f32 %v1253_v35, %v1201_v33 }
 0x555   :  { %1213 = vst [vmem:[#allocation12 + $0x18] sm:$0xff] %v1207_v32 }
 0x556   :  { %1212 = vst [vmem:[#allocation12 + $0x10] sm:$0xff] %v1202_v39 }
 0x557   :  { %1821 = shalt.err (!%p1818_p8)
}
 0x558   :  { %s1822_s29 = scalar_lea.hbm %s2265_s6, 512 }
 0x559   :  { %p1823_p9 = scmp.ne.s32.totalorder %s2265_s6, %s1822_s29  ;;  %p1826_p10 = scmp.lt.u32.totalorder %s1822_s29, %s2265_s6 }
 0x55b   :  { %p1828_p11 = pnand %p1826_p10, %p1823_p9 }
 0x55d   :  { %1831 = shalt.err (!%p1828_p11)
}
 0x55e   :  { %1225 = dma.vmem_to_hbm [thread:$0]  %s1220_s26, 512, %s2265_s6, [#allocation6], %s1844_s1, %s1844_s1, %s1845_s21  }
 0x55f   :  { %1838 = dma.done.wait [#allocation6], 512  }
 0x560   :  { %1839 = vsyncadd [#allocation6], 4294966784 }
 0x561   :  { %1229 = vsyncpa [#allocation5], 1 }
 0x562   :  { %1230 = vsyncpa [#allocation8], 1 }
 0x563   :  { %1231 = vsyncpa [#allocation11], 1 }
 0x564   :  { %1232 = vsyncpa [#allocation6], 1 }

</bundles_post_ra>
